<compile_context>
chip_gen: v5e
topology: v5e:2x2
jax: 0.10.0
libtpu: 0.0.40
codegen_flags: <defaults>
</compile_context>

<pallas_src>
import jax
import jax.numpy as jnp
from jax.experimental import pallas as pl
from jax.experimental.pallas import tpu as pltpu

# Constants undefined in the reference snippet -> small deterministic values.
CRITIC_HIDDEN_0 = 64
CRITIC_HIDDEN_1 = 32

_TB_MAX = 8192  # ~2 MiB of f32 input rows per block at indim ~64


def _critic_value_kernel(x_ref, w0_ref, b0_ref, w1_ref, b1_ref, w2_ref, b2_ref, o_ref):
    """One batch tile of the fused 3-layer MLP (no activations, as in forward())."""
    x = x_ref[...]                                                        # [TB, indim]
    # Layers 0 / 1: MXU matmuls with f32 accumulation; bias adds in f32 on the VPU.
    h0 = jnp.dot(x, w0_ref[...], preferred_element_type=jnp.float32) + b0_ref[...]
    h1 = jnp.dot(h0, w1_ref[...], preferred_element_type=jnp.float32) + b1_ref[...]
    # Layer 2 has a single output column: broadcast-multiply + lane reduction
    # (VPU/XLU) instead of wasting an MXU pass on a 1-column matmul.
    q = jnp.sum(h1 * w2_ref[...], axis=-1, keepdims=True) + b2_ref[...]   # [TB, 1]
    o_ref[...] = q.astype(o_ref.dtype)


def prepare_params(params):
    """One-time repack of PyTorch-layout params into kernel layout.

    Hoisted out of the per-call path: (out,in) weights -> (in,out), biases ->
    row vectors, final-layer weight -> [1, hidden_1] row for the VPU reduction.
    Call once after init / checkpoint load, reuse every forward.
    """
    return {
        "w0": jnp.asarray(params["w0"]).T,                 # [indim, H0]
        "b0": jnp.asarray(params["b0"]).reshape(1, -1),    # [1, H0]
        "w1": jnp.asarray(params["w1"]).T,                 # [H0, H1]
        "b1": jnp.asarray(params["b1"]).reshape(1, -1),    # [1, H1]
        "w2": jnp.asarray(params["w2"]).reshape(1, -1),    # [1, H1]
        "b2": jnp.asarray(params["b2"]).reshape(1, 1),     # [1, 1]
    }


def critic_value_forward(state, prepared, *, tb_max=_TB_MAX):
    """state: [B, indim]  ->  value: [B, 1] (f32)."""
    B, indim = state.shape
    w0, b0 = prepared["w0"], prepared["b0"]
    w1, b1 = prepared["w1"], prepared["b1"]
    w2, b2 = prepared["w2"], prepared["b2"]
    assert w0.shape[0] == indim, (w0.shape, indim)
    h0 = w0.shape[1]
    h1 = w1.shape[1]

    # Batch tile: a single block if the batch is small (full-dim block satisfies
    # the (8,128) rule), otherwise large 8-aligned blocks so the DMA pipeline
    # runs near the HBM roofline.
    tb = B if B <= tb_max else tb_max
    grid = (pl.cdiv(B, tb),)

    batch_map = lambda i: (i, 0)
    resident = lambda i: (0, 0)   # same block every step -> stays resident in VMEM

    return pl.pallas_call(
        _critic_value_kernel,
        out_shape=jax.ShapeDtypeStruct((B, 1), jnp.float32),
        grid=grid,
        in_specs=[
            pl.BlockSpec((tb, indim), batch_map),   # state tile (pipelined)
            pl.BlockSpec((indim, h0), resident),    # w0
            pl.BlockSpec((1, h0), resident),        # b0
            pl.BlockSpec((h0, h1), resident),       # w1
            pl.BlockSpec((1, h1), resident),        # b1
            pl.BlockSpec((1, h1), resident),        # w2 (row vector)
            pl.BlockSpec((1, 1), resident),         # b2
        ],
        out_specs=pl.BlockSpec((tb, 1), batch_map),
        compiler_params=pltpu.CompilerParams(
            dimension_semantics=("parallel",),      # megacore-shard the batch axis
            vmem_limit_bytes=32 * 1024 * 1024,      # safe on v5e/v6e/v7x; tiles ~4-8 MiB
        ),
    )(state, w0, b0, w1, b1, w2, b2)


def init_params(key, indim, h0=CRITIC_HIDDEN_0, h1=CRITIC_HIDDEN_1):
    """Deterministic init mimicking nn.Linear default: U(-1/sqrt(fan_in), +1/sqrt(fan_in))."""
    ks = jax.random.split(key, 6)

    def lin(kw, kb, fan_in, fan_out):
        bound = 1.0 / jnp.sqrt(jnp.float32(fan_in))
        w = jax.random.uniform(kw, (fan_out, fan_in), jnp.float32, -bound, bound)
        b = jax.random.uniform(kb, (fan_out,), jnp.float32, -bound, bound)
        return w, b

    w0, b0 = lin(ks[0], ks[1], indim, h0)
    w1, b1 = lin(ks[2], ks[3], h0, h1)
    w2, b2 = lin(ks[4], ks[5], h1, 1)
    return {"w0": w0, "b0": b0, "w1": w1, "b1": b1, "w2": w2, "b2": b2}


def _reference(state, p):
    h0 = state @ p["w0"].T + p["b0"]
    h1 = h0 @ p["w1"].T + p["b1"]
    return h1 @ p["w2"].T + p["b2"]


if __name__ == "__main__":
    key = jax.random.PRNGKey(0)
    k_p, k_s0, k_s1 = jax.random.split(key, 3)

    indim = 61  # arbitrary state dim; kernel handles non-128-aligned feature dims
    params = init_params(k_p, indim)
    prepared = prepare_params(params)

    # Small batch: single block, whole problem resident in VMEM.
    state = jax.random.normal(k_s0, (2, indim), jnp.float32)
    q = jax.block_until_ready(critic_value_forward(state, prepared))
    q_ref = _reference(state, params)
    assert q.shape == (2, 1), q.shape
    assert jnp.allclose(q, q_ref, atol=1e-3, rtol=1e-3), (q, q_ref)

    # Larger batch forcing a multi-step grid (3 blocks of 8 rows) to exercise the
    # pipelined/tiled path with VMEM-resident weights.
    state2 = jax.random.normal(k_s1, (24, indim), jnp.float32)
    q2 = jax.block_until_ready(critic_value_forward(state2, prepared, tb_max=8))
    q2_ref = _reference(state2, params)
    assert q2.shape == (24, 1), q2.shape
    assert jnp.allclose(q2, q2_ref, atol=1e-3, rtol=1e-3), (q2, q2_ref)

    print("KERNEL_OK")
</pallas_src>

<mosaic_0001>
module attributes {stable_mosaic.version = 11 : i64} {
  func.func @_critic_value_kernel(%arg0: i32, %arg1: memref<2x61xf32, #tpu.memory_space<vmem>>, %arg2: memref<61x64xf32, #tpu.memory_space<vmem>>, %arg3: memref<1x64xf32, #tpu.memory_space<vmem>>, %arg4: memref<64x32xf32, #tpu.memory_space<vmem>>, %arg5: memref<1x32xf32, #tpu.memory_space<vmem>>, %arg6: memref<1x32xf32, #tpu.memory_space<vmem>>, %arg7: memref<1x1xf32, #tpu.memory_space<vmem>>, %arg8: memref<2x1xf32, #tpu.memory_space<vmem>>) attributes {dimension_semantics = [#tpu.dimension_semantics<parallel>], iteration_bounds = array<i64: 1>, scalar_prefetch = 0 : i64, scratch_operands = 0 : i64, tpu.core_type = #tpu.core_type<tc>, window_params = [{transform_indices = @transform_0, window_bounds = array<i64: 2, 61>}, {pipeline_mode = #tpu.pipeline_mode<synchronous>, transform_indices = @transform_1, window_bounds = array<i64: 61, 64>}, {pipeline_mode = #tpu.pipeline_mode<synchronous>, transform_indices = @transform_2, window_bounds = array<i64: 1, 64>}, {pipeline_mode = #tpu.pipeline_mode<synchronous>, transform_indices = @transform_3, window_bounds = array<i64: 64, 32>}, {pipeline_mode = #tpu.pipeline_mode<synchronous>, transform_indices = @transform_4, window_bounds = array<i64: 1, 32>}, {pipeline_mode = #tpu.pipeline_mode<synchronous>, transform_indices = @transform_5, window_bounds = array<i64: 1, 32>}, {pipeline_mode = #tpu.pipeline_mode<synchronous>, transform_indices = @transform_6, window_bounds = array<i64: 1, 1>}, {transform_indices = @transform_7, window_bounds = array<i64: 2, 1>}]} {
    %c0 = arith.constant 0 : index
    %c0_0 = arith.constant 0 : index
    %0 = vector.load %arg1[%c0, %c0_0] : memref<2x61xf32, #tpu.memory_space<vmem>>, vector<2x61xf32>
    %c0_1 = arith.constant 0 : index
    %c0_2 = arith.constant 0 : index
    %1 = vector.load %arg2[%c0_1, %c0_2] : memref<61x64xf32, #tpu.memory_space<vmem>>, vector<61x64xf32>
    %cst = arith.constant dense<0.000000e+00> : vector<2x64xf32>
    %2 = tpu.matmul %0, %1, %cst {dimension_numbers = #tpu.dot_dimension_numbers<[1], [0], [0], [1], [0, 0, 1, 1], [], []>} : vector<2x61xf32>, vector<61x64xf32>, vector<2x64xf32> -> vector<2x64xf32>
    %c0_3 = arith.constant 0 : index
    %c0_4 = arith.constant 0 : index
    %3 = vector.load %arg3[%c0_3, %c0_4] : memref<1x64xf32, #tpu.memory_space<vmem>>, vector<1x64xf32>
    %4 = vector.broadcast %3 : vector<1x64xf32> to vector<2x64xf32>
    %5 = arith.addf %2, %4 : vector<2x64xf32>
    %c0_5 = arith.constant 0 : index
    %c0_6 = arith.constant 0 : index
    %6 = vector.load %arg4[%c0_5, %c0_6] : memref<64x32xf32, #tpu.memory_space<vmem>>, vector<64x32xf32>
    %cst_7 = arith.constant dense<0.000000e+00> : vector<2x32xf32>
    %7 = tpu.matmul %5, %6, %cst_7 {dimension_numbers = #tpu.dot_dimension_numbers<[1], [0], [0], [1], [0, 0, 1, 1], [], []>} : vector<2x64xf32>, vector<64x32xf32>, vector<2x32xf32> -> vector<2x32xf32>
    %c0_8 = arith.constant 0 : index
    %c0_9 = arith.constant 0 : index
    %8 = vector.load %arg5[%c0_8, %c0_9] : memref<1x32xf32, #tpu.memory_space<vmem>>, vector<1x32xf32>
    %9 = vector.broadcast %8 : vector<1x32xf32> to vector<2x32xf32>
    %10 = arith.addf %7, %9 : vector<2x32xf32>
    %c0_10 = arith.constant 0 : index
    %c0_11 = arith.constant 0 : index
    %11 = vector.load %arg6[%c0_10, %c0_11] : memref<1x32xf32, #tpu.memory_space<vmem>>, vector<1x32xf32>
    %12 = vector.broadcast %11 : vector<1x32xf32> to vector<2x32xf32>
    %13 = arith.mulf %10, %12 : vector<2x32xf32>
    %cst_12 = arith.constant dense<0.000000e+00> : vector<2xf32>
    %14 = vector.multi_reduction <add>, %13, %cst_12 [1] : vector<2x32xf32> to vector<2xf32>
    %15 = vector.shape_cast %14 : vector<2xf32> to vector<2x1xf32>
    %c0_13 = arith.constant 0 : index
    %c0_14 = arith.constant 0 : index
    %16 = vector.load %arg7[%c0_13, %c0_14] : memref<1x1xf32, #tpu.memory_space<vmem>>, vector<1x1xf32>
    %17 = vector.broadcast %16 : vector<1x1xf32> to vector<2x1xf32>
    %18 = arith.addf %15, %17 : vector<2x1xf32>
    %c0_15 = arith.constant 0 : index
    %c0_16 = arith.constant 0 : index
    %19 = vector.load %arg8[%c0_15, %c0_16] : memref<2x1xf32, #tpu.memory_space<vmem>>, vector<2x1xf32>
    tpu.vector_store %arg8[%c0_15, %c0_16], %18 {strides = array<i32>} : memref<2x1xf32, #tpu.memory_space<vmem>>, vector<2x1xf32>,
    return
  }
  func.func @transform_0(%arg0: i32) -> (i32, i32) {
    %c0_i32 = arith.constant 0 : i32
    %c0_i32_0 = arith.constant 0 : i32
    return %arg0, %c0_i32 : i32, i32
  }
  func.func @transform_1(%arg0: i32) -> (i32, i32) {
    %c0_i32 = arith.constant 0 : i32
    %c0_i32_0 = arith.constant 0 : i32
    %c0_i32_1 = arith.constant 0 : i32
    return %c0_i32, %c0_i32_0 : i32, i32
  }
  func.func @transform_2(%arg0: i32) -> (i32, i32) {
    %c0_i32 = arith.constant 0 : i32
    %c0_i32_0 = arith.constant 0 : i32
    %c0_i32_1 = arith.constant 0 : i32
    return %c0_i32, %c0_i32_0 : i32, i32
  }
  func.func @transform_3(%arg0: i32) -> (i32, i32) {
    %c0_i32 = arith.constant 0 : i32
    %c0_i32_0 = arith.constant 0 : i32
    %c0_i32_1 = arith.constant 0 : i32
    return %c0_i32, %c0_i32_0 : i32, i32
  }
  func.func @transform_4(%arg0: i32) -> (i32, i32) {
    %c0_i32 = arith.constant 0 : i32
    %c0_i32_0 = arith.constant 0 : i32
    %c0_i32_1 = arith.constant 0 : i32
    return %c0_i32, %c0_i32_0 : i32, i32
  }
  func.func @transform_5(%arg0: i32) -> (i32, i32) {
    %c0_i32 = arith.constant 0 : i32
    %c0_i32_0 = arith.constant 0 : i32
    %c0_i32_1 = arith.constant 0 : i32
    return %c0_i32, %c0_i32_0 : i32, i32
  }
  func.func @transform_6(%arg0: i32) -> (i32, i32) {
    %c0_i32 = arith.constant 0 : i32
    %c0_i32_0 = arith.constant 0 : i32
    %c0_i32_1 = arith.constant 0 : i32
    return %c0_i32, %c0_i32_0 : i32, i32
  }
  func.func @transform_7(%arg0: i32) -> (i32, i32) {
    %c0_i32 = arith.constant 0 : i32
    %c0_i32_0 = arith.constant 0 : i32
    return %arg0, %c0_i32 : i32, i32
  }
}

</mosaic_0001>

<bundles_post_ra>
// kernel: tpu_custom_call.1
= control target key start
LH: loop header
LB: loop body
LE: loop exit
PB: predicated region body
PF: predicated region fallthrough
CT: control target
= control target key end

     0   :  { %vm45_vm0 = vcmask 1044480   ;;  %vm41_vm1 = vcmask 498688   ;;  %vm81_vm2 = vcmask 523264   ;;  %vm110_vm3 = vcmask 254976   ;;  %s238_s1 = inlined_call_operand.vmem [shape: f32[61,64], index: 1, kind: input, shape index: {}]   ;;  %s239_s3 = inlined_call_operand.vmem [shape: f32[64,32], index: 3, kind: input, shape index: {}]   ;;  %s240_s2 = inlined_call_operand.vmem [shape: f32[1,64], index: 2, kind: input, shape index: {}]   ;;  %s241_s0 = inlined_call_operand.vmem [shape: f32[2,61], index: 0, kind: input, shape index: {}]   ;;  %s242_s4 = inlined_call_operand.vmem [shape: f32[1,32], index: 4, kind: input, shape index: {}]   ;;  %s243_s5 = inlined_call_operand.vmem [shape: f32[1,32], index: 5, kind: input, shape index: {}]   ;;  %s244_s6 = inlined_call_operand.<no memory space> [shape: f32[1,1], index: 6, kind: input, shape index: {}]   ;;  %s245_s7 = inlined_call_operand.vmem [shape: f32[2,1], index: 7, kind: output, shape index: {}]  }
   0x1   :  { %v36_v0 = vld [vmem:[%s238_s1 + $0x38] sm:$0x1f]  ;;  %v35_v1 = vld [vmem:[%s238_s1 + $0x30] sm:$0xff]  ;;  %v34_v2 = vld [vmem:[%s238_s1 + $0x28] sm:$0xff]  ;;  %v12_v20 = vstv %s244_s6  ;;  %vm119_vm4 = vcmask 1024  }
   0x2   :  { %125 = vmatpush.msk.msra.mxu0 %vm45_vm0, %v36_v0  ;;  %v76_v3 = vld [vmem:[%s239_s3 + $0x38] sm:$0xff]  ;;  %v75_v4 = vld [vmem:[%s239_s3 + $0x30] sm:$0xff]  ;;  %v33_v5 = vld [vmem:[%s238_s1 + $0x20] sm:$0xff]  ;;  %13 = vst [vmem:[#allocation2] sm:$0x1] %v12_v20 }
   0x3   :  { %93 = vmatpush.msra.mxu1 %v76_v3  ;;  %v74_v6 = vld [vmem:[%s239_s3 + $0x28] sm:$0xff]  ;;  %v32_v7 = vld [vmem:[%s238_s1 + $0x18] sm:$0xff]  ;;  %v73_v8 = vld [vmem:[%s239_s3 + $0x20] sm:$0xff] }
   0x4   :  { %58 = vmatpush.msra.mxu0 %v35_v1  ;;  %v31_v9 = vld [vmem:[%s238_s1 + $0x10] sm:$0xff]  ;;  %v72_v10 = vld [vmem:[%s239_s3 + $0x18] sm:$0xff]  ;;  %v30_v11 = vld [vmem:[%s238_s1 + $0x8] sm:$0xff] }
   0x5   :  { %94 = vmatpush.msra.mxu1 %v75_v4  ;;  %v71_v12 = vld [vmem:[%s239_s3 + $0x10] sm:$0xff]  ;;  %v29_v13 = vld [vmem:[%s238_s1] sm:$0xff]  ;;  %v70_v15 = vld [vmem:[%s239_s3 + $0x8] sm:$0xff] }
   0x6   :  { %59 = vmatpush.msra.mxu0 %v34_v2  ;;  %v28_v14 = vld [vmem:[%s241_s0] sm:$0x3] }
   0x7   :  { %95 = vmatpush.msra.mxu1 %v74_v6  ;;  %v69_v16 = vld [vmem:[%s239_s3] sm:$0xff] }
   0x8   :  { %60 = vmatpush.msra.mxu0 %v33_v5  ;;  %v128_v17 = vld [vmem:[%s240_s2] ss:$0 sm:$0xff] }
   0x9   :  { %96 = vmatpush.msra.mxu1 %v73_v8  ;;  %v129_v21 = vld [vmem:[%s242_s4] ss:$0 sm:$0xff] }
   0xa   :  { %61 = vmatpush.msra.mxu0 %v32_v7  ;;  %v130_v22 = vld [vmem:[%s243_s5] ss:$0 sm:$0xff] }
   0xb   :  { %97 = vmatpush.msra.mxu1 %v72_v10  ;;  %v131_v27 = vld [vmem:[#allocation2] ss:$0 sm:$0xff] }
   0xc   :  { %62 = vmatpush.msra.mxu0 %v31_v9 }
   0xd   :  { %98 = vmatpush.msra.mxu1 %v71_v12 }
   0xe   :  { %63 = vmatpush.msra.mxu0 %v30_v11 }
   0xf   :  { %99 = vmatpush.msra.mxu1 %v70_v15 }
  0x10   :  { %64 = vmatpush.msra.mxu0 %v29_v13 }
  0x11   :  { %126 = vmatmul.msk.f32.vlgmr.msra.gmra.mxu0 %vm41_vm1, %v28_v14  ;;  %100 = vmatpush.msra.mxu1 %v69_v16 }
  0x8e   :  { %v66_v18 = vpop.f32.mrf.mxu0 }
  0x8f   :  { %v67_v19 = vadd.f32 %v128_v17, %v66_v18 }
  0x91   :  { %127 = vmatmul.msk.f32.vlgmr.msra.gmra.mxu1 %vm81_vm2, %v67_v19 }
 0x10e   :  { %v102_v23 = vpop.f32.mrf.mxu1 }
 0x10f   :  { %v103_v24 = vadd.f32 %v129_v21, %v102_v23 }
 0x111   :  { %v109_v25 = vmul.f32 %v130_v22, %v103_v24 }
 0x113   :  { %v111_v26 = vsel %vm110_vm3, %v109_v25, 0.0 }
 0x114   :  { %112 = vadd.xlane.f32.xlu0 %v111_v26 }
 0x187   :  { %v113_v28 = vpop.xlane.xlu0 %112 }
 0x188   :  { %v118_v29 = vadd.f32 %v131_v27, %v113_v28 }
 0x18a   :  { %120 = vst.msk [vmem:[%s245_s7] sm:$0x3] %vm119_vm4, %v118_v29 }

</bundles_post_ra>
